<compile_context>
chip_gen: v7x
topology: tpu7x:2x2x1
jax: 0.10.0
libtpu: 0.0.40
codegen_flags: <defaults>
</compile_context>

<pallas_src>
import functools

import jax
import jax.numpy as jnp
from jax import lax
from jax.experimental import pallas as pl
from jax.experimental.pallas import tpu as pltpu


# Approximate count of live full-width f32 temporaries per input element inside
# the kernel (d1, d2, c1, c2, e1, e2 + slack for un-fused binary-op results).
_F32_TEMPS = 8
_DEFAULT_VMEM = 64 * 1024 * 1024          # v7x per-TensorCore capacity (worst case)


def _round_up(x, m):
    return -(-x // m) * m


def _vmem_capacity_bytes():
    """Physical VMEM of the local chip (per TensorCore); conservative fallback."""
    try:
        cap = int(pltpu.get_tpu_info().vmem_capacity_bytes)
        if cap > 0:
            return cap
    except Exception:
        pass
    return _DEFAULT_VMEM


def _vmem_budget():
    cap = _vmem_capacity_bytes()
    # Let Mosaic use 3/4 of physical VMEM (48 MiB on v7x, 96 MiB on v5e/v6e —
    # well above the 16/32 MiB scoped defaults) and size tiles against 80% of
    # that so double-buffered inputs + f32 temporaries keep headroom.
    vmem_limit = max(min((cap * 3) // 4, cap - 4 * 1024 * 1024), 16 * 1024 * 1024)
    tile_budget = (vmem_limit * 4) // 5
    return vmem_limit, tile_budget


def _recip(x):
    """EUP approximate reciprocal + one Newton step (~f32 accuracy).

    Only applied to narrow per-row / per-column operands; the wide work then
    becomes a multiply instead of a VPU divide.
    """
    r = pl.reciprocal(x, approx=True)
    return r * (2.0 - x * r)


def _per_distribution_loss(d1, d2, axis):
    """Per-distribution CORLoss terms; the N-bin reduction runs along `axis`.

    axis=1: bins on lanes   (wide-N layout, (TB, N) blocks) -> (TB, 1) result.
    axis=0: bins on sublanes (batch-on-lanes layout, (N, TB) blocks) -> (1, TB).
    """
    n = d1.shape[axis]
    inv_n = 1.0 / n
    inv_nm1 = 1.0 / (n - 1)

    # Fused centered moments; c1/c2 are reused for std, cov AND the
    # shift-invariant softmax, so they are materialized once.
    m1 = jnp.sum(d1, axis=axis, keepdims=True) * inv_n
    m2 = jnp.sum(d2, axis=axis, keepdims=True) * inv_n
    c1 = d1 - m1
    c2 = d2 - m2
    ss1 = jnp.sum(c1 * c1, axis=axis, keepdims=True)
    ss2 = jnp.sum(c2 * c2, axis=axis, keepdims=True)
    sp12 = jnp.sum(c1 * c2, axis=axis, keepdims=True)
    s12 = jnp.sum(c1 + c2, axis=axis, keepdims=True)   # sum(c1)+sum(c2) (~0 up to rounding)

    std1 = jnp.sqrt(ss1 * inv_nm1)                     # ddof=1 (torch.std default)
    std2 = jnp.sqrt(ss2 * inv_nm1)
    # Faithful expansion of sum((c1-1e-3)*(c2-1e-3)); keeps the rounding-level
    # -1e-3*(sum(c1)+sum(c2)) terms instead of assuming they vanish exactly.
    cov = (sp12 - 1.0e-3 * s12 + n * 1.0e-6) * inv_nm1

    ratio = cov * _recip(std1 * std2 + 0.001)
    cor = ratio * ratio * ratio
    # TODO(synk): inherited from the PyTorch code — if cor <= -1.001 this log is NaN.
    temp_loss_1 = -jnp.log((cor + 1.001) * 0.5)

    # softmax L1 distance (the degenerate emd_loss with r=2 on (N,1) views).
    # softmax is shift-invariant -> work directly on the centered tensors.
    # TODO(synk): on v6e/v7x this branch could run in bf16 (bf16 EUP/VALU) for
    # ~10-25% more throughput; kept f32 for accuracy and v5e portability.
    e1 = jnp.exp(c1 - jnp.max(c1, axis=axis, keepdims=True))
    e2 = jnp.exp(c2 - jnp.max(c2, axis=axis, keepdims=True))
    inv_l1 = _recip(jnp.sum(e1, axis=axis, keepdims=True))
    inv_l2 = _recip(jnp.sum(e2, axis=axis, keepdims=True))
    temp_loss_2 = jnp.sum(jnp.abs(e1 * inv_l1 - e2 * inv_l2),
                          axis=axis, keepdims=True) * inv_n

    abs_cor = jnp.abs(cor)
    return abs_cor * temp_loss_1 + (1.0 - abs_cor) * temp_loss_2


# ---------------------------------------------------------------------------
# Wide-N path (N >= 128): batch on sublanes, bins on lanes.
# ---------------------------------------------------------------------------

def _cor_loss_kernel_wide_n(d1_ref, d2_ref, out_ref, *, batch):
    d1 = d1_ref[...].astype(jnp.float32)              # (TB, N)
    d2 = d2_ref[...].astype(jnp.float32)
    tb = d1.shape[0]
    per_row = _per_distribution_loss(d1, d2, axis=1)  # (TB, 1)
    # Mask padded rows of a partial last tile, reduce to one scalar per grid
    # step and store it as a 128-lane splat: one unmasked lane-dense vst
    # instead of TB/8 masked 1-lane stores.
    row = pl.program_id(0) * tb + lax.broadcasted_iota(jnp.int32, (tb, 1), 0)
    partial = jnp.sum(jnp.where(row < batch, per_row, 0.0),
                      axis=0, keepdims=True)           # (1, 1)
    out_ref[...] = jnp.broadcast_to(jnp.reshape(partial, (1, 1, 1)), (1, 1, 128))


def _choose_rows_tile(b, n, in_itemsize, budget_bytes):
    # Working set per row: 2 inputs x 2 pipeline buffers in the stored dtype
    # plus ~_F32_TEMPS full-width f32 temporaries; lanes pad to multiples of 128.
    bytes_per_row = _round_up(n, 128) * (4 * in_itemsize + _F32_TEMPS * 4)
    tb = budget_bytes // max(1, bytes_per_row)
    tb = max(8, (tb // 8) * 8)
    if b > 8:
        # Keep at least 2 grid steps so v7x's second TensorCore gets work on the
        # "parallel" axis; ~neutral (+0.35 us) on single-TC v5e/v6e.
        tb = min(tb, _round_up(-(-b // 2), 8))
    return b if tb >= b else tb


def _cor_loss_wide_n(d1, d2, tile):
    b, n = d1.shape
    vmem_limit, budget = _vmem_budget()
    if tile is None:
        tb = _choose_rows_tile(b, n, jnp.dtype(d1.dtype).itemsize, budget)
    else:
        tb = int(tile)
        assert tb == b or tb % 8 == 0, "row tile must be 8-aligned or == batch"
    num_tiles = -(-b // tb)
    # TODO(synk): if n >= 128 but n % 128 != 0, padding bins to a lane multiple
    # (with in-kernel masking of the pad) would avoid partially-used lane vregs.

    per_tile = pl.pallas_call(
        functools.partial(_cor_loss_kernel_wide_n, batch=b),
        out_shape=jax.ShapeDtypeStruct((num_tiles, 1, 128), jnp.float32),
        grid=(num_tiles,),
        in_specs=[
            pl.BlockSpec((tb, n), lambda i: (i, 0)),
            pl.BlockSpec((tb, n), lambda i: (i, 0)),
        ],
        out_specs=pl.BlockSpec((1, 1, 128), lambda i: (i, 0, 0)),
        compiler_params=pltpu.CompilerParams(
            dimension_semantics=("parallel",),
            vmem_limit_bytes=vmem_limit,
        ),
    )(d1, d2)
    # Trivial final reduction over the per-tile partial sums (lane 0 holds the value).
    return jnp.sum(per_tile[:, 0, 0]).reshape((1,))


# ---------------------------------------------------------------------------
# Small-N path (N < 128): transpose so BATCH lies on the lane axis.
# ---------------------------------------------------------------------------

def _cor_loss_kernel_small_n(d1_ref, d2_ref, out_ref, *, batch):
    d1 = d1_ref[...].astype(jnp.float32)              # (N, TB) — batch on lanes
    d2 = d2_ref[...].astype(jnp.float32)
    tb = d1.shape[1]
    per_col = _per_distribution_loss(d1, d2, axis=0)  # (1, TB) — lane-dense already
    col = pl.program_id(0) * tb + lax.broadcasted_iota(jnp.int32, (1, tb), 1)
    out_ref[...] = jnp.where(col < batch, per_col, 0.0)


def _choose_cols_tile(b, n, in_itemsize, budget_bytes):
    bytes_per_col = _round_up(max(n, 8), 8) * (4 * in_itemsize + _F32_TEMPS * 4)
    tb = budget_bytes // max(1, bytes_per_col)
    tb = max(128, (tb // 128) * 128)
    if b > 128:
        # >= 2 grid steps whenever the batch allows it (v7x megacore).
        tb = min(tb, _round_up(-(-b // 2), 128))
    return b if tb >= b else tb


def _cor_loss_small_n(d1, d2, tile):
    b, n = d1.shape
    d1t = jnp.transpose(d1)     # (N, B): full 128-lane occupancy for small N
    d2t = jnp.transpose(d2)
    vmem_limit, budget = _vmem_budget()
    if tile is None:
        tb = _choose_cols_tile(b, n, jnp.dtype(d1.dtype).itemsize, budget)
    else:
        tb = int(tile)
        assert tb == b or tb % 128 == 0, "column tile must be 128-aligned or == batch"
    num_tiles = -(-b // tb)

    per_col = pl.pallas_call(
        functools.partial(_cor_loss_kernel_small_n, batch=b),
        out_shape=jax.ShapeDtypeStruct((1, num_tiles * tb), jnp.float32),
        grid=(num_tiles,),
        in_specs=[
            pl.BlockSpec((n, tb), lambda i: (0, i)),
            pl.BlockSpec((n, tb), lambda i: (0, i)),
        ],
        out_specs=pl.BlockSpec((1, tb), lambda i: (0, i)),
        compiler_params=pltpu.CompilerParams(
            dimension_semantics=("parallel",),
            vmem_limit_bytes=vmem_limit,
        ),
    )(d1t, d2t)
    # Padded columns were masked to 0 in-kernel.
    return jnp.sum(per_col).reshape((1,))


# ---------------------------------------------------------------------------
# Public entry point + pure-JAX reference.
# ---------------------------------------------------------------------------

def cor_loss(distribution1, distribution2, *, tile=None):
    """Pallas implementation of CORLoss.forward. Inputs squeeze to (B, N)."""
    d1 = jnp.squeeze(jnp.asarray(distribution1))
    d2 = jnp.squeeze(jnp.asarray(distribution2))
    assert d1.shape == d2.shape and d1.ndim == 2, (d1.shape, d2.shape)
    _, n = d1.shape
    assert n >= 2, "need at least 2 bins per distribution (ddof=1 std)"
    if n < 128:
        return _cor_loss_small_n(d1, d2, tile)
    return _cor_loss_wide_n(d1, d2, tile)


def _cor_loss_reference(d1, d2):
    """Pure-JAX reference with identical semantics, for verification."""
    d1 = jnp.squeeze(jnp.asarray(d1, jnp.float32))
    d2 = jnp.squeeze(jnp.asarray(d2, jnp.float32))
    _, n = d1.shape
    m1 = jnp.mean(d1, axis=1, keepdims=True)
    m2 = jnp.mean(d2, axis=1, keepdims=True)
    std1 = jnp.std(d1, axis=1, keepdims=True, ddof=1)
    std2 = jnp.std(d2, axis=1, keepdims=True, ddof=1)
    cov = jnp.sum((d1 - (m1 + 0.001)) * (d2 - (m2 + 0.001)),
                  axis=1, keepdims=True) / (n - 1)
    cor = (cov / (std1 * std2 + 0.001)) ** 3
    tl1 = -jnp.log((cor + 1.001) / 2.0)
    s1 = jax.nn.softmax(d1, axis=1)
    s2 = jax.nn.softmax(d2, axis=1)
    tl2 = jnp.mean(jnp.abs(s1 - s2), axis=1, keepdims=True)
    per = jnp.abs(cor) * tl1 + (1.0 - jnp.abs(cor)) * tl2
    return jnp.sum(per).reshape((1,))


if __name__ == "__main__":
    key = jax.random.PRNGKey(0)
    k1, k2, k3, k4, k5, k6 = jax.random.split(key, 6)

    # Test 1: conv-head-like (B, N, 1, 1) input, small bins -> batch-on-lanes
    # path, single full-dims block.
    B, N = 4, 16
    d1 = jax.random.normal(k1, (B, N, 1, 1), dtype=jnp.float32)
    d2 = jax.random.normal(k2, (B, N, 1, 1), dtype=jnp.float32)
    out = jax.block_until_ready(cor_loss(d1, d2))
    ref = _cor_loss_reference(d1, d2)
    assert out.shape == (1,)
    assert jnp.allclose(out, ref, rtol=1e-3, atol=1e-4), (out, ref)

    # Test 2: small-N, larger batch, forced 128-wide lane tiles
    # (2 tiles, last one partial and masked) -> exercises the transposed path's
    # tiling / "parallel" grid / column masking.
    B2, N2 = 200, 16
    d1b = jax.random.normal(k3, (B2, N2), dtype=jnp.float32)
    d2b = jax.random.normal(k4, (B2, N2), dtype=jnp.float32)
    out2 = jax.block_until_ready(cor_loss(d1b, d2b, tile=128))
    ref2 = _cor_loss_reference(d1b, d2b)
    assert out2.shape == (1,)
    assert jnp.allclose(out2, ref2, rtol=1e-3, atol=1e-4), (out2, ref2)

    # Test 3: wide-N path (N >= 128); default tiling gives 2 row tiles
    # (last one partial) with lane-dense per-tile partial-sum outputs.
    B3, N3 = 20, 256
    d1c = jax.random.normal(k5, (B3, N3), dtype=jnp.float32)
    d2c = jax.random.normal(k6, (B3, N3), dtype=jnp.float32)
    out3 = jax.block_until_ready(cor_loss(d1c, d2c))
    ref3 = _cor_loss_reference(d1c, d2c)
    assert out3.shape == (1,)
    assert jnp.allclose(out3, ref3, rtol=1e-3, atol=1e-4), (out3, ref3)

    print("KERNEL_OK")
</pallas_src>

<mosaic_0001>
module attributes {stable_mosaic.version = 11 : i64} {
  func.func @_cor_loss_kernel_small_n(%arg0: i32, %arg1: memref<16x4xf32, #tpu.memory_space<vmem>>, %arg2: memref<16x4xf32, #tpu.memory_space<vmem>>, %arg3: memref<1x4xf32, #tpu.memory_space<vmem>>) attributes {dimension_semantics = [#tpu.dimension_semantics<parallel>], iteration_bounds = array<i64: 1>, scalar_prefetch = 0 : i64, scratch_operands = 0 : i64, tpu.core_type = #tpu.core_type<tc>, window_params = [{transform_indices = @transform_0, window_bounds = array<i64: 16, 4>}, {transform_indices = @transform_1, window_bounds = array<i64: 16, 4>}, {transform_indices = @transform_2, window_bounds = array<i64: 1, 4>}]} {
    %c0 = arith.constant 0 : index
    %c0_0 = arith.constant 0 : index
    %0 = vector.load %arg1[%c0, %c0_0] : memref<16x4xf32, #tpu.memory_space<vmem>>, vector<16x4xf32>
    %c0_1 = arith.constant 0 : index
    %c0_2 = arith.constant 0 : index
    %1 = vector.load %arg2[%c0_1, %c0_2] : memref<16x4xf32, #tpu.memory_space<vmem>>, vector<16x4xf32>
    %cst = arith.constant dense<0.000000e+00> : vector<4xf32>
    %2 = vector.multi_reduction <add>, %0, %cst [0] : vector<16x4xf32> to vector<4xf32>
    %3 = vector.shape_cast %2 : vector<4xf32> to vector<1x4xf32>
    %cst_3 = arith.constant 6.250000e-02 : f32
    %4 = vector.broadcast %cst_3 : f32 to vector<1x4xf32>
    %5 = arith.mulf %3, %4 : vector<1x4xf32>
    %cst_4 = arith.constant dense<0.000000e+00> : vector<4xf32>
    %6 = vector.multi_reduction <add>, %1, %cst_4 [0] : vector<16x4xf32> to vector<4xf32>
    %7 = vector.shape_cast %6 : vector<4xf32> to vector<1x4xf32>
    %cst_5 = arith.constant 6.250000e-02 : f32
    %8 = vector.broadcast %cst_5 : f32 to vector<1x4xf32>
    %9 = arith.mulf %7, %8 : vector<1x4xf32>
    %10 = vector.broadcast %5 : vector<1x4xf32> to vector<16x4xf32>
    %11 = arith.subf %0, %10 : vector<16x4xf32>
    %12 = vector.broadcast %9 : vector<1x4xf32> to vector<16x4xf32>
    %13 = arith.subf %1, %12 : vector<16x4xf32>
    %14 = arith.mulf %11, %11 : vector<16x4xf32>
    %cst_6 = arith.constant dense<0.000000e+00> : vector<4xf32>
    %15 = vector.multi_reduction <add>, %14, %cst_6 [0] : vector<16x4xf32> to vector<4xf32>
    %16 = vector.shape_cast %15 : vector<4xf32> to vector<1x4xf32>
    %17 = arith.mulf %13, %13 : vector<16x4xf32>
    %cst_7 = arith.constant dense<0.000000e+00> : vector<4xf32>
    %18 = vector.multi_reduction <add>, %17, %cst_7 [0] : vector<16x4xf32> to vector<4xf32>
    %19 = vector.shape_cast %18 : vector<4xf32> to vector<1x4xf32>
    %20 = arith.mulf %11, %13 : vector<16x4xf32>
    %cst_8 = arith.constant dense<0.000000e+00> : vector<4xf32>
    %21 = vector.multi_reduction <add>, %20, %cst_8 [0] : vector<16x4xf32> to vector<4xf32>
    %22 = vector.shape_cast %21 : vector<4xf32> to vector<1x4xf32>
    %23 = arith.addf %11, %13 : vector<16x4xf32>
    %cst_9 = arith.constant dense<0.000000e+00> : vector<4xf32>
    %24 = vector.multi_reduction <add>, %23, %cst_9 [0] : vector<16x4xf32> to vector<4xf32>
    %25 = vector.shape_cast %24 : vector<4xf32> to vector<1x4xf32>
    %cst_10 = arith.constant 0.0666666701 : f32
    %26 = vector.broadcast %cst_10 : f32 to vector<1x4xf32>
    %27 = arith.mulf %16, %26 : vector<1x4xf32>
    %28 = math.sqrt %27 : vector<1x4xf32>
    %cst_11 = arith.constant 0.0666666701 : f32
    %29 = vector.broadcast %cst_11 : f32 to vector<1x4xf32>
    %30 = arith.mulf %19, %29 : vector<1x4xf32>
    %31 = math.sqrt %30 : vector<1x4xf32>
    %cst_12 = arith.constant 1.000000e-03 : f32
    %32 = vector.broadcast %cst_12 : f32 to vector<1x4xf32>
    %33 = arith.mulf %32, %25 : vector<1x4xf32>
    %34 = arith.subf %22, %33 : vector<1x4xf32>
    %cst_13 = arith.constant 1.600000e-05 : f32
    %35 = vector.broadcast %cst_13 : f32 to vector<1x4xf32>
    %36 = arith.addf %34, %35 : vector<1x4xf32>
    %cst_14 = arith.constant 0.0666666701 : f32
    %37 = vector.broadcast %cst_14 : f32 to vector<1x4xf32>
    %38 = arith.mulf %36, %37 : vector<1x4xf32>
    %39 = arith.mulf %28, %31 : vector<1x4xf32>
    %cst_15 = arith.constant 1.000000e-03 : f32
    %40 = vector.broadcast %cst_15 : f32 to vector<1x4xf32>
    %41 = arith.addf %39, %40 : vector<1x4xf32>
    %42 = tpu.reciprocal %41 {approx = true} : vector<1x4xf32> -> vector<1x4xf32>
    %43 = arith.mulf %41, %42 : vector<1x4xf32>
    %cst_16 = arith.constant 2.000000e+00 : f32
    %44 = vector.broadcast %cst_16 : f32 to vector<1x4xf32>
    %45 = arith.subf %44, %43 : vector<1x4xf32>
    %46 = arith.mulf %42, %45 : vector<1x4xf32>
    %47 = arith.mulf %38, %46 : vector<1x4xf32>
    %48 = arith.mulf %47, %47 : vector<1x4xf32>
    %49 = arith.mulf %48, %47 : vector<1x4xf32>
    %cst_17 = arith.constant 1.001000e+00 : f32
    %50 = vector.broadcast %cst_17 : f32 to vector<1x4xf32>
    %51 = arith.addf %49, %50 : vector<1x4xf32>
    %cst_18 = arith.constant 5.000000e-01 : f32
    %52 = vector.broadcast %cst_18 : f32 to vector<1x4xf32>
    %53 = arith.mulf %51, %52 : vector<1x4xf32>
    %54 = math.log %53 : vector<1x4xf32>
    %cst_19 = arith.constant 0.000000e+00 : f32
    %55 = vector.broadcast %cst_19 : f32 to vector<1x4xf32>
    %56 = arith.subf %55, %54 : vector<1x4xf32>
    %cst_20 = arith.constant dense<0xFF800000> : vector<4xf32>
    %57 = vector.multi_reduction <maximumf>, %11, %cst_20 [0] : vector<16x4xf32> to vector<4xf32>
    %58 = vector.shape_cast %57 : vector<4xf32> to vector<1x4xf32>
    %59 = vector.broadcast %58 : vector<1x4xf32> to vector<16x4xf32>
    %60 = arith.subf %11, %59 : vector<16x4xf32>
    %61 = math.exp %60 : vector<16x4xf32>
    %cst_21 = arith.constant dense<0xFF800000> : vector<4xf32>
    %62 = vector.multi_reduction <maximumf>, %13, %cst_21 [0] : vector<16x4xf32> to vector<4xf32>
    %63 = vector.shape_cast %62 : vector<4xf32> to vector<1x4xf32>
    %64 = vector.broadcast %63 : vector<1x4xf32> to vector<16x4xf32>
    %65 = arith.subf %13, %64 : vector<16x4xf32>
    %66 = math.exp %65 : vector<16x4xf32>
    %cst_22 = arith.constant dense<0.000000e+00> : vector<4xf32>
    %67 = vector.multi_reduction <add>, %61, %cst_22 [0] : vector<16x4xf32> to vector<4xf32>
    %68 = vector.shape_cast %67 : vector<4xf32> to vector<1x4xf32>
    %69 = tpu.reciprocal %68 {approx = true} : vector<1x4xf32> -> vector<1x4xf32>
    %70 = arith.mulf %68, %69 : vector<1x4xf32>
    %cst_23 = arith.constant 2.000000e+00 : f32
    %71 = vector.broadcast %cst_23 : f32 to vector<1x4xf32>
    %72 = arith.subf %71, %70 : vector<1x4xf32>
    %73 = arith.mulf %69, %72 : vector<1x4xf32>
    %cst_24 = arith.constant dense<0.000000e+00> : vector<4xf32>
    %74 = vector.multi_reduction <add>, %66, %cst_24 [0] : vector<16x4xf32> to vector<4xf32>
    %75 = vector.shape_cast %74 : vector<4xf32> to vector<1x4xf32>
    %76 = tpu.reciprocal %75 {approx = true} : vector<1x4xf32> -> vector<1x4xf32>
    %77 = arith.mulf %75, %76 : vector<1x4xf32>
    %cst_25 = arith.constant 2.000000e+00 : f32
    %78 = vector.broadcast %cst_25 : f32 to vector<1x4xf32>
    %79 = arith.subf %78, %77 : vector<1x4xf32>
    %80 = arith.mulf %76, %79 : vector<1x4xf32>
    %81 = vector.broadcast %73 : vector<1x4xf32> to vector<16x4xf32>
    %82 = arith.mulf %61, %81 : vector<16x4xf32>
    %83 = vector.broadcast %80 : vector<1x4xf32> to vector<16x4xf32>
    %84 = arith.mulf %66, %83 : vector<16x4xf32>
    %85 = arith.subf %82, %84 : vector<16x4xf32>
    %86 = math.absf %85 : vector<16x4xf32>
    %cst_26 = arith.constant dense<0.000000e+00> : vector<4xf32>
    %87 = vector.multi_reduction <add>, %86, %cst_26 [0] : vector<16x4xf32> to vector<4xf32>
    %88 = vector.shape_cast %87 : vector<4xf32> to vector<1x4xf32>
    %cst_27 = arith.constant 6.250000e-02 : f32
    %89 = vector.broadcast %cst_27 : f32 to vector<1x4xf32>
    %90 = arith.mulf %88, %89 : vector<1x4xf32>
    %91 = math.absf %49 : vector<1x4xf32>
    %92 = arith.mulf %91, %56 : vector<1x4xf32>
    %cst_28 = arith.constant 1.000000e+00 : f32
    %93 = vector.broadcast %cst_28 : f32 to vector<1x4xf32>
    %94 = arith.subf %93, %91 : vector<1x4xf32>
    %95 = arith.mulf %94, %90 : vector<1x4xf32>
    %96 = arith.addf %92, %95 : vector<1x4xf32>
    %c4_i32 = arith.constant 4 : i32
    %97 = arith.muli %arg0, %c4_i32 : i32
    %98 = tpu.iota {dimensions = array<i32: 1>} : vector<1x4xi32>
    %99 = vector.broadcast %97 : i32 to vector<1x4xi32>
    %100 = arith.addi %99, %98 : vector<1x4xi32>
    %c4_i32_29 = arith.constant 4 : i32
    %101 = vector.broadcast %c4_i32_29 : i32 to vector<1x4xi32>
    %102 = arith.cmpi slt, %100, %101 : vector<1x4xi32>
    %cst_30 = arith.constant 0.000000e+00 : f32
    %103 = vector.broadcast %cst_30 : f32 to vector<1x4xf32>
    %104 = arith.select %102, %96, %103 : vector<1x4xi1>, vector<1x4xf32>
    %c0_31 = arith.constant 0 : index
    %c0_32 = arith.constant 0 : index
    %105 = vector.load %arg3[%c0_31, %c0_32] : memref<1x4xf32, #tpu.memory_space<vmem>>, vector<1x4xf32>
    tpu.vector_store %arg3[%c0_31, %c0_32], %104 {strides = array<i32>} : memref<1x4xf32, #tpu.memory_space<vmem>>, vector<1x4xf32>,
    return
  }
  func.func @transform_0(%arg0: i32) -> (i32, i32) {
    %c0_i32 = arith.constant 0 : i32
    %c0_i32_0 = arith.constant 0 : i32
    return %c0_i32, %arg0 : i32, i32
  }
  func.func @transform_1(%arg0: i32) -> (i32, i32) {
    %c0_i32 = arith.constant 0 : i32
    %c0_i32_0 = arith.constant 0 : i32
    return %c0_i32, %arg0 : i32, i32
  }
  func.func @transform_2(%arg0: i32) -> (i32, i32) {
    %c0_i32 = arith.constant 0 : i32
    %c0_i32_0 = arith.constant 0 : i32
    return %c0_i32, %arg0 : i32, i32
  }
}

</mosaic_0001>

<bundles_post_ra>
// kernel: tpu_custom_call.1
= control target key start
LH: loop header
LB: loop body
LE: loop exit
PB: predicated region body
PF: predicated region fallthrough
CT: control target
= control target key end

     0   :  { %7 = vsyncpa [#allocation3], 0  ;;  %vm16_vm0 = vcmask 31744   ;;  %vm205_vm6 = vcmask 24576   ;;  %s360_s0 = inlined_call_operand.vmem [shape: f32[16,4], index: 0, kind: input, shape index: {}]   ;;  %s361_s1 = inlined_call_operand.vmem [shape: f32[16,4], index: 1, kind: input, shape index: {}]   ;;  %s362_s2 = inlined_call_operand.hbm [shape: f32[1,4], index: 2, kind: output, shape index: {}]  }
   0x1   :  { %v12_v0 = vld [vmem:[%s360_s0] sm:$0xff]  ;;  %v13_v1 = vld [vmem:[%s360_s0 + $0x8] sm:$0xff]  ;;  %s266_s0 = smov [#allocation2]  }
   0x2   :  { %v14_v2 = vld [vmem:[%s361_s1] sm:$0xff]  ;;  %v15_v3 = vld [vmem:[%s361_s1 + $0x8] sm:$0xff]  ;;  %v17_v4 = vsel %vm16_vm0, %v12_v0, 0.0  ;;  %v18_v5 = vsel %vm16_vm0, %v13_v1, 0.0  ;;  %s213_s1 = sshll.u32 %s266_s0, 4  ;;  %s214_s1 = int_to_ptr.vmem [resolvable:$true] %s213_s1 }
   0x3   :  { %v19_v6 = vadd.f32 %v18_v5, %v17_v4  ;;  %v27_v7 = vsel %vm16_vm0, %v14_v2, 0.0  ;;  %v28_v8 = vsel %vm16_vm0, %v15_v3, 0.0  ;;  %s242_s17 = scalar_lea.vmem %s214_s1, 16  ;;  %s246_s18 = scalar_lea.vmem %s214_s1, 32 }
   0x4   :  { %v29_v9 = vadd.f32 %v28_v8, %v27_v7  ;;  %p243_p0 = scmp.ne.s32.totalorder %s214_s1, %s242_s17  ;;  %p247_p1 = scmp.lt.s32.totalorder %s214_s1, %s214_s1 }
   0x5   :  { %v20_v10 = vrot.slane %v19_v6, 4  ;;  %p248_p2 = scmp.lt.s32.totalorder %s246_s18, %s242_s17 }
   0x6   :  { %v30_v11 = vrot.slane %v29_v9, 4 }
   0x7   :  { %v21_v12 = vadd.f32 %v20_v10, %v19_v6  ;;  %p249_p3 = por %p248_p2, %p247_p1 }
   0x8   :  { %v31_v13 = vadd.f32 %v30_v11, %v29_v9 }
   0x9   :  { %v22_v14 = vrot.slane %v21_v12, 2  ;;  %p250_p4 = pnand %p249_p3, %p243_p0 }
   0xa   :  { %v32_v15 = vrot.slane %v31_v13, 2 }
   0xb   :  { %v23_v16 = vadd.f32 %v22_v14, %v21_v12 }
   0xc   :  { %v33_v17 = vadd.f32 %v32_v15, %v31_v13 }
   0xd   :  { %v24_v18 = vrot.slane %v23_v16, 1 }
   0xe   :  { %v34_v19 = vrot.slane %v33_v17, 1 }
   0xf   :  { %v25_v20 = vadd.f32 %v24_v18, %v23_v16 }
  0x10   :  { %v35_v21 = vadd.f32 %v34_v19, %v33_v17 }
  0x11   :  { %v26_v22 = vmul.f32 0.0625, %v25_v20 }
  0x12   :  { %v36_v23 = vmul.f32 0.0625, %v35_v21 }
  0x13   :  { %v298_v24 = vsub.f32 %v12_v0, %v26_v22  ;;  %v300_v25 = vsub.f32 %v13_v1, %v26_v22 }
  0x14   :  { %v302_v26 = vsub.f32 %v14_v2, %v36_v23  ;;  %v304_v27 = vsub.f32 %v15_v3, %v36_v23 }
  0x15   :  { %v41_v28 = vmul.f32 %v298_v24, %v298_v24  ;;  %v42_v29 = vmul.f32 %v300_v25, %v300_v25  ;;  %v119_v34 = vsel %vm16_vm0, %v298_v24, -inf  ;;  %v120_v35 = vsel %vm16_vm0, %v300_v25, -inf }
  0x16   :  { %v52_v30 = vmul.f32 %v302_v26, %v302_v26  ;;  %v53_v31 = vmul.f32 %v304_v27, %v304_v27  ;;  %v74_v41 = vadd.f32 %v302_v26, %v298_v24  ;;  %v75_v42 = vadd.f32 %v304_v27, %v300_v25 }
  0x17   :  { %v43_v32 = vsel %vm16_vm0, %v41_v28, 0.0  ;;  %v44_v33 = vsel %vm16_vm0, %v42_v29, 0.0  ;;  %v121_v43 = vmax.f32 %v119_v34, %v120_v35  ;;  %v134_v45 = vsel %vm16_vm0, %v302_v26, -inf }
  0x18   :  { %v45_v36 = vadd.f32 %v44_v33, %v43_v32  ;;  %v54_v37 = vsel %vm16_vm0, %v52_v30, 0.0  ;;  %v55_v38 = vsel %vm16_vm0, %v53_v31, 0.0  ;;  %v135_v46 = vsel %vm16_vm0, %v304_v27, -inf }
  0x19   :  { %v56_v39 = vadd.f32 %v55_v38, %v54_v37  ;;  %v122_v48 = vrot.slane %v121_v43, 4  ;;  %v63_v50 = vmul.f32 %v302_v26, %v298_v24  ;;  %v64_v51 = vmul.f32 %v304_v27, %v300_v25 }
  0x1a   :  { %v46_v40 = vrot.slane %v45_v36, 4  ;;  %v136_v52 = vmax.f32 %v134_v45, %v135_v46  ;;  %v76_v54 = vsel %vm16_vm0, %v74_v41, 0.0  ;;  %v77_v55 = vsel %vm16_vm0, %v75_v42, 0.0 }
  0x1b   :  { %v57_v44 = vrot.slane %v56_v39, 4  ;;  %v123_v56 = vmax.f32 %v121_v43, %v122_v48  ;;  %v78_v62 = vadd.f32 %v77_v55, %v76_v54  ;;  %v65_v1 = vsel %vm16_vm0, %v63_v50, 0.0 }
  0x1c   :  { %v47_v47 = vadd.f32 %v46_v40, %v45_v36  ;;  %v137_v58 = vrot.slane %v136_v52, 4  ;;  %v66_v2 = vsel %vm16_vm0, %v64_v51, 0.0 }
  0x1d   :  { %v58_v49 = vadd.f32 %v57_v44, %v56_v39  ;;  %v124_v60 = vrot.slane %v123_v56, 2  ;;  %v67_v9 = vadd.f32 %v66_v2, %v65_v1  ;;  %v79_v10 = vrot.slane %v78_v62, 4 }
  0x1e   :  { %v48_v53 = vrot.slane %v47_v47, 2  ;;  %v138_v63 = vmax.f32 %v136_v52, %v137_v58 }
  0x1f   :  { %v59_v57 = vrot.slane %v58_v49, 2  ;;  %v125_v3 = vmax.f32 %v123_v56, %v124_v60  ;;  %v68_v16 = vrot.slane %v67_v9, 4  ;;  %v80_v17 = vadd.f32 %v79_v10, %v78_v62 }
  0x20   :  { %v49_v59 = vadd.f32 %v48_v53, %v47_v47  ;;  %v139_v5 = vrot.slane %v138_v63, 2 }
  0x21   :  { %v60_v61 = vadd.f32 %v59_v57, %v58_v49  ;;  %v126_v7 = vrot.slane %v125_v3, 1  ;;  %v69_v28 = vadd.f32 %v68_v16, %v67_v9  ;;  %v81_v29 = vrot.slane %v80_v17, 2 }
  0x22   :  { %v50_v0 = vrot.slane %v49_v59, 1  ;;  %v140_v11 = vmax.f32 %v138_v63, %v139_v5 }
  0x23   :  { %v61_v4 = vrot.slane %v60_v61, 1  ;;  %v127_v13 = vmax.f32 %v125_v3, %v126_v7  ;;  %v70_v33 = vrot.slane %v69_v28, 2  ;;  %v82_v34 = vadd.f32 %v81_v29, %v80_v17 }
  0x24   :  { %v51_v6 = vadd.f32 %v50_v0, %v49_v59  ;;  %v141_v15 = vrot.slane %v140_v11, 1 }
  0x25   :  { %v62_v8 = vadd.f32 %v61_v4, %v60_v61  ;;  %v128_v18 = vsub.f32 %v298_v24, %v127_v13  ;;  %v129_v19 = vsub.f32 %v300_v25, %v127_v13  ;;  %v71_v38 = vadd.f32 %v70_v33, %v69_v28 }
  0x26   :  { %v85_v12 = vmul.f32 0.06666667, %v51_v6  ;;  %v142_v20 = vmax.f32 %v140_v11, %v141_v15 }
  0x27   :  { %v93_v14 = vmul.f32 0.06666667, %v62_v8  ;;  %v130_v21 = vmul.f32 1.442695, %v128_v18  ;;  %v132_v22 = vmul.f32 1.442695, %v129_v19 }
  0x28   :  { %222 = vrsqrt.f32 %v85_v12  ;;  %v143_v23 = vsub.f32 %v302_v26, %v142_v20  ;;  %v144_v30 = vsub.f32 %v304_v27, %v142_v20  ;;  %vm88_vm1 = vcmp.eq.f32.partialorder %v85_v12, inf }
  0x29   :  { %224 = vrsqrt.f32 %v93_v14  ;;  %v91_v25 = vand.u32 2147483648, %v85_v12  ;;  %vm90_vm2 = vcmp.eq.f32.partialorder %v85_v12, 0.0  ;;  %vm96_vm3 = vcmp.eq.f32.partialorder %v93_v14, inf }
  0x2a   :  { %226 = vpow2.f32 %v130_v21  ;;  %v145_v31 = vmul.f32 1.442695, %v143_v23  ;;  %v147_v32 = vmul.f32 1.442695, %v144_v30  ;;  %v99_v26 = vand.u32 2147483648, %v93_v14 }
  0x2b   :  { %228 = vpow2.f32 %v132_v22  ;;  %vm98_vm4 = vcmp.eq.f32.partialorder %v93_v14, 0.0  ;;  %v83_v27 = vrot.slane %v82_v34, 1  ;;  %v72_v46 = vrot.slane %v71_v38, 1 }
  0x2c   :  { %230 = vpow2.f32 %v145_v31 }
  0x2d   :  { %232 = vpow2.f32 %v147_v32  ;;  %v84_v47 = vadd.f32 %v83_v27, %v82_v34  ;;  %v73_v56 = vadd.f32 %v72_v46, %v71_v38 }
  0x2f   :  { %v101_v57 = vmul.f32 0.001, %v84_v47 }
  0x31   :  { %v102_v62 = vsub.f32 %v73_v56, %v101_v57 }
  0x32   :  { %v223_v24 = vpop.eup %222 }
  0x33   :  { %v225_v35 = vpop.eup %224  ;;  %v87_v36 = vmul.f32 %v223_v24, %v85_v12  ;;  %v103_v3 = vadd.f32 1.6e-05, %v102_v62 }
  0x34   :  { %v95_v37 = vmul.f32 %v225_v35, %v93_v14  ;;  %v227_v43 = vpop.eup %226 }
  0x35   :  { %v89_v39 = vsel %vm88_vm1, %v85_v12, %v87_v36  ;;  %v229_v45 = vpop.eup %228  ;;  %v149_v48 = vsel %vm16_vm0, %v227_v43, 0.0  ;;  %v104_v10 = vmul.f32 0.06666667, %v103_v3 }
  0x36   :  { %v92_v40 = vsel %vm90_vm2, %v91_v25, %v89_v39  ;;  %v97_v41 = vsel %vm96_vm3, %v93_v14, %v95_v37  ;;  %v231_v49 = vpop.eup %230  ;;  %v150_v51 = vsel %vm16_vm0, %v229_v45, 0.0 }
  0x37   :  { %v100_v42 = vsel %vm98_vm4, %v99_v26, %v97_v41  ;;  %v233_v52 = vpop.eup %232  ;;  %v151_v53 = vadd.f32 %v150_v51, %v149_v48  ;;  %v162_v54 = vsel %vm16_vm0, %v231_v49, 0.0 }
  0x38   :  { %v105_v44 = vmul.f32 %v100_v42, %v92_v40  ;;  %v163_v55 = vsel %vm16_vm0, %v233_v52, 0.0 }
  0x39   :  { %v152_v58 = vrot.slane %v151_v53, 4  ;;  %v164_v59 = vadd.f32 %v163_v55, %v162_v54 }
  0x3a   :  { %v106_v50 = vadd.f32 0.001, %v105_v44 }
  0x3b   :  { %v153_v60 = vadd.f32 %v152_v58, %v151_v53  ;;  %v165_v61 = vrot.slane %v164_v59, 4 }
  0x3c   :  { %234 = vrcp.f32 %v106_v50 }
  0x3d   :  { %v154_v63 = vrot.slane %v153_v60, 2  ;;  %v166_v0 = vadd.f32 %v165_v61, %v164_v59 }
  0x3f   :  { %v155_v1 = vadd.f32 %v154_v63, %v153_v60  ;;  %v167_v2 = vrot.slane %v166_v0, 2 }
  0x41   :  { %v156_v4 = vrot.slane %v155_v1, 1  ;;  %v168_v5 = vadd.f32 %v167_v2, %v166_v0 }
  0x43   :  { %v157_v8 = vadd.f32 %v156_v4, %v155_v1  ;;  %v169_v9 = vrot.slane %v168_v5, 1 }
  0x45   :  { %236 = vrcp.f32 %v157_v8  ;;  %v170_v12 = vadd.f32 %v169_v9, %v168_v5 }
  0x46   :  { %v235_v6 = vpop.eup %234 }
  0x47   :  { %v108_v7 = vmul.f32 %v235_v6, %v106_v50  ;;  %238 = vrcp.f32 %v170_v12 }
  0x49   :  { %v109_v11 = vsub.f32 2.0, %v108_v7 }
  0x4b   :  { %v110_v13 = vmul.f32 %v235_v6, %v109_v11 }
  0x4d   :  { %v111_v14 = vmul.f32 %v110_v13, %v104_v10 }
  0x4f   :  { %v112_v15 = vmul.f32 %v111_v14, %v111_v14  ;;  %v237_v17 = vpop.eup %236 }
  0x50   :  { %v159_v19 = vmul.f32 %v237_v17, %v157_v8 }
  0x51   :  { %v113_v16 = vmul.f32 %v112_v15, %v111_v14  ;;  %v239_v20 = vpop.eup %238 }
  0x52   :  { %v160_v21 = vsub.f32 2.0, %v159_v19  ;;  %v172_v22 = vmul.f32 %v239_v20, %v170_v12 }
  0x53   :  { %v114_v18 = vadd.f32 1.001, %v113_v16 }
  0x54   :  { %v161_v28 = vmul.f32 %v237_v17, %v160_v21  ;;  %v173_v29 = vsub.f32 2.0, %v172_v22 }
  0x55   :  { %v115_v23 = vmul.f32 0.5, %v114_v18 }
  0x56   :  { %v174_v30 = vmul.f32 %v239_v20, %v173_v29  ;;  %v175_v31 = vmul.f32 %v227_v43, %v161_v28  ;;  %v176_v32 = vmul.f32 %v229_v45, %v161_v28  ;;  %v193_v43 = vand.u32 2147483647, %v113_v16 }
  0x57   :  { %240 = vlog2.f32 %v115_v23  ;;  %v199_v45 = vlaneseq }
  0x58   :  { %v177_v33 = vmul.f32 %v231_v49, %v174_v30  ;;  %v178_v34 = vmul.f32 %v233_v52, %v174_v30  ;;  %v195_v49 = vsub.f32 1.0, %v193_v43 }
  0x59   :  { %v200_v50 = vand.u32 127, %v199_v45 }
  0x5a   :  { %v179_v24 = vsub.f32 %v175_v31, %v177_v33  ;;  %v180_v25 = vsub.f32 %v176_v32, %v178_v34 }
  0x5b   :  { %vm203_vm5 = vcmp.lt.s32.totalorder %v200_v50, 4 }
  0x5c   :  { %v181_v35 = vand.u32 2147483647, %v179_v24  ;;  %v182_v36 = vand.u32 2147483647, %v180_v25 }
  0x5e   :  { %v183_v26 = vsel %vm16_vm0, %v181_v35, 0.0  ;;  %v184_v37 = vsel %vm16_vm0, %v182_v36, 0.0 }
  0x5f   :  { %v185_v38 = vadd.f32 %v184_v37, %v183_v26 }
  0x61   :  { %v186_v27 = vrot.slane %v185_v38, 4  ;;  %v241_v39 = vpop.eup %240 }
  0x62   :  { %v117_v41 = vmul.f32 0.6931472, %v241_v39 }
  0x63   :  { %v187_v40 = vadd.f32 %v186_v27, %v185_v38 }
  0x64   :  { %v118_v46 = vsub.f32 0.0, %v117_v41 }
  0x65   :  { %v188_v42 = vrot.slane %v187_v40, 2 }
  0x66   :  { %v194_v52 = vmul.f32 %v193_v43, %v118_v46 }
  0x67   :  { %v189_v44 = vadd.f32 %v188_v42, %v187_v40 }
  0x69   :  { %v190_v47 = vrot.slane %v189_v44, 1 }
  0x6b   :  { %v191_v48 = vadd.f32 %v190_v47, %v189_v44 }
  0x6d   :  { %v192_v51 = vmul.f32 0.0625, %v191_v48 }
  0x6f   :  { %v196_v53 = vmul.f32 %v195_v49, %v192_v51 }
  0x71   :  { %v197_v54 = vadd.f32 %v196_v53, %v194_v52 }
  0x73   :  { %v204_v55 = vsel %vm203_vm5, %v197_v54, 0.0 }
  0x74   :  { %206 = vst.msk [vmem:[#allocation2] sm:$0x1] %vm205_vm6, %v204_v55 }
  0x75   :  { %253 = shalt.err (!%p250_p4)
}
  0x76   :  { %s254_s21 = scalar_lea.hbm %s362_s2, 16 }
  0x77   :  { %p255_p5 = scmp.ne.s32.totalorder %s362_s2, %s254_s21  ;;  %p258_p6 = scmp.lt.u32.totalorder %s254_s21, %s362_s2 }
  0x79   :  { %p260_p7 = pnand %p258_p6, %p255_p5 }
  0x7b   :  { %263 = shalt.err (!%p260_p7)
}
  0x7c   :  { %216 = dma.vmem_to_hbm [thread:$0]  %s214_s1, 16, %s362_s2, [#allocation3]  }
  0x7d   :  { %264 = dma.done.wait [#allocation3], 16  }
  0x7e   :  { %265 = vsyncadd [#allocation3], 4294967280 }
  0x7f   :  { %220 = vsyncpa [#allocation3], 1 }

</bundles_post_ra>
